<compile_context>
chip_gen: v7x
topology: tpu7x:2x2x1
jax: 0.10.0
libtpu: 0.0.40
codegen_flags: <defaults>
</compile_context>

<pallas_src>
import jax
import jax.numpy as jnp
from jax.experimental import pallas as pl
from jax.experimental.pallas import tpu as pltpu


_LANES = 128
_BLOCK_BYTES = 4 * 1024 * 1024       # ~4 MiB per block; (in+out) x 2 buffers = 16 MiB
_VMEM_LIMIT = 32 * 1024 * 1024       # explicit: v5e default scoped VMEM is only 16 MiB


def _copy_slab_kernel(x_ref, o_ref):
    # Pure copy of one lane-dense (block_rows, 128) tile.
    o_ref[...] = x_ref[...]


def _sublane_align(dtype) -> int:
    """Packed-sublane alignment: 8 rows for 32-bit, 16 for 16-bit, 32 for 8-bit."""
    itemsize = jnp.dtype(dtype).itemsize
    if itemsize >= 4:
        return 8
    if itemsize == 2:
        return 16
    return 32


def _pick_block_rows(rows: int, dtype) -> int:
    """Fixed ~4 MiB, sublane-aligned block row count (cdiv grid masks any ragged tail)."""
    align = _sublane_align(dtype)
    itemsize = jnp.dtype(dtype).itemsize
    target = max(align, (_BLOCK_BYTES // (_LANES * itemsize)) // align * align)
    if rows > target:
        return target
    # Whole slab would fit in one block: still split into >= 2 aligned blocks when
    # there is enough work, so the "parallel" grid axis can use both v7x TensorCores.
    if rows >= 2 * align:
        half = -(-rows // 2)              # ceil(rows / 2)
        half = -(-half // align) * align  # round up to sublane alignment
        return min(half, rows)
    # Tiny slab: single block equal to the full array extent (legal block shape).
    return rows


def _pallas_squeeze_copy(x):
    """Explicit-copy version of squeeze(1), tiled as a lane-dense flat slab."""
    n, c, h, w = x.shape
    assert c == 1, "ReshapeClassifier expects channel dim of size 1 to squeeze"
    total = n * h * w

    # Flatten and pad to a multiple of 128 lanes so the kernel only ever sees a
    # lane-dense (rows, 128) slab -> unmasked full-vreg stores on every block.
    x1d = x.reshape(total)
    pad = (-total) % _LANES
    if pad:
        x1d = jnp.pad(x1d, (0, pad))
    rows = (total + pad) // _LANES
    x_flat = x1d.reshape(rows, _LANES)

    block_rows = _pick_block_rows(rows, x.dtype)
    grid = (pl.cdiv(rows, block_rows),)

    out_flat = pl.pallas_call(
        _copy_slab_kernel,
        out_shape=jax.ShapeDtypeStruct((rows, _LANES), x.dtype),
        grid=grid,
        in_specs=[pl.BlockSpec((block_rows, _LANES), lambda i: (i, 0))],
        out_specs=pl.BlockSpec((block_rows, _LANES), lambda i: (i, 0)),
        compiler_params=pltpu.CompilerParams(
            dimension_semantics=("parallel",),   # megacore sharding when grid > 1
            vmem_limit_bytes=_VMEM_LIMIT,
        ),
    )(x_flat)

    out1d = out_flat.reshape(rows * _LANES)
    if pad:
        out1d = out1d[:total]
    return out1d.reshape(n, h, w)


def reshape_classifier_forward(x, use_pallas_copy=False):
    """Equivalent of torch `x.squeeze(1)` for x of shape (N, 1, H, W) -> (N, H, W).

    Default path is a metadata-only reshape (zero HBM traffic).  Set
    use_pallas_copy=True only if a fused explicit copy is required.
    """
    assert x.shape[1] == 1, "ReshapeClassifier expects channel dim of size 1 to squeeze"
    if use_pallas_copy:
        return _pallas_squeeze_copy(x)
    return jnp.squeeze(x, axis=1)


if __name__ == "__main__":
    key = jax.random.PRNGKey(0)

    # NCHW input with C=1 so squeeze(1) is well defined: (2, 1, 16, 16)
    x = jax.random.normal(key, (2, 1, 16, 16), dtype=jnp.float32)
    ref = jnp.squeeze(x, axis=1)

    # Primary (free, reshape-only) path.
    out_fast = jax.block_until_ready(reshape_classifier_forward(x))
    assert out_fast.shape == (2, 16, 16), out_fast.shape
    assert out_fast.dtype == x.dtype
    assert jnp.array_equal(out_fast, ref)

    # Pallas explicit-copy path (lane-dense slab kernel).
    out_pallas = jax.block_until_ready(reshape_classifier_forward(x, use_pallas_copy=True))
    assert out_pallas.shape == (2, 16, 16), out_pallas.shape
    assert out_pallas.dtype == x.dtype
    assert jnp.array_equal(out_pallas, ref)

    # Exercise the multi-block (grid >= 2) path: rows = 64 -> two 32-row blocks.
    x2 = jax.random.normal(jax.random.PRNGKey(1), (2, 1, 64, 64), dtype=jnp.float32)
    out2 = jax.block_until_ready(reshape_classifier_forward(x2, use_pallas_copy=True))
    assert jnp.array_equal(out2, jnp.squeeze(x2, axis=1))

    # Exercise the non-multiple-of-128 (padded tail) path: total = 3*5*7 = 105.
    x3 = jax.random.normal(jax.random.PRNGKey(2), (3, 1, 5, 7), dtype=jnp.float32)
    out3 = jax.block_until_ready(reshape_classifier_forward(x3, use_pallas_copy=True))
    assert out3.shape == (3, 5, 7)
    assert jnp.array_equal(out3, jnp.squeeze(x3, axis=1))

    print("KERNEL_OK")
</pallas_src>

<mosaic_0001>
module attributes {stable_mosaic.version = 11 : i64} {
  func.func @_copy_slab_kernel(%arg0: i32, %arg1: memref<4x128xf32, #tpu.memory_space<vmem>>, %arg2: memref<4x128xf32, #tpu.memory_space<vmem>>) attributes {dimension_semantics = [#tpu.dimension_semantics<parallel>], iteration_bounds = array<i64: 1>, scalar_prefetch = 0 : i64, scratch_operands = 0 : i64, tpu.core_type = #tpu.core_type<tc>, window_params = [{transform_indices = @transform_0, window_bounds = array<i64: 4, 128>}, {transform_indices = @transform_1, window_bounds = array<i64: 4, 128>}]} {
    %c0 = arith.constant 0 : index
    %c0_0 = arith.constant 0 : index
    %0 = vector.load %arg1[%c0, %c0_0] : memref<4x128xf32, #tpu.memory_space<vmem>>, vector<4x128xf32>
    %c0_1 = arith.constant 0 : index
    %c0_2 = arith.constant 0 : index
    %1 = vector.load %arg2[%c0_1, %c0_2] : memref<4x128xf32, #tpu.memory_space<vmem>>, vector<4x128xf32>
    tpu.vector_store %arg2[%c0_1, %c0_2], %0 {strides = array<i32>} : memref<4x128xf32, #tpu.memory_space<vmem>>, vector<4x128xf32>,
    return
  }
  func.func @transform_0(%arg0: i32) -> (i32, i32) {
    %c0_i32 = arith.constant 0 : i32
    %c0_i32_0 = arith.constant 0 : i32
    return %arg0, %c0_i32 : i32, i32
  }
  func.func @transform_1(%arg0: i32) -> (i32, i32) {
    %c0_i32 = arith.constant 0 : i32
    %c0_i32_0 = arith.constant 0 : i32
    return %arg0, %c0_i32 : i32, i32
  }
}

</mosaic_0001>

<bundles_post_ra>
// kernel: tpu_custom_call.1
= control target key start
LH: loop header
LB: loop body
LE: loop exit
PB: predicated region body
PF: predicated region fallthrough
CT: control target
= control target key end

     0   :  { %6 = vsyncpa [#allocation3], 0  ;;  %s124_s0 = inlined_call_operand.hbm [shape: f32[4,128], index: 0, kind: input, shape index: {}]   ;;  %s125_s1 = inlined_call_operand.hbm [shape: f32[4,128], index: 1, kind: output, shape index: {}]  }
   0x1   :  { %7 = vsyncpa [#allocation4], 0  ;;  %s88_s6 = smov [#allocation2]   ;;  %s40_s10 = scalar_lea.hbm %s124_s0, 64 }
   0x2   :  { %s14_s7 = sshll.u32 %s88_s6, 4  ;;  %p41_p0 = scmp.ne.s32.totalorder %s124_s0, %s40_s10  ;;  %s15_s7 = int_to_ptr.vmem [resolvable:$true] %s14_s7 }
   0x3   :  { %p44_p1 = scmp.lt.u32.totalorder %s40_s10, %s124_s0 }
   0x5   :  { %p46_p2 = pnand %p44_p1, %p41_p0 }
   0x7   :  { %49 = shalt.err (!%p46_p2)
}
   0x8   :  { %s50_s15 = scalar_lea.vmem %s15_s7, 64  ;;  %p55_p4 = scmp.lt.s32.totalorder %s15_s7, %s15_s7 }
   0x9   :  { %p51_p3 = scmp.ne.s32.totalorder %s15_s7, %s50_s15  ;;  %p56_p5 = scmp.lt.s32.totalorder %s50_s15, %s50_s15 }
   0xb   :  { %p57_p6 = por %p56_p5, %p55_p4 }
   0xd   :  { %p58_p7 = pnand %p57_p6, %p51_p3 }
   0xf   :  { %61 = shalt.err (!%p58_p7)
}
  0x10   :  { %17 = dma.hbm_to_vmem [thread:$0]  %s124_s0, 64, %s15_s7, [#allocation3]  }
  0x11   :  { %84 = dma.done.wait [#allocation3], 64  }
  0x12   :  { %85 = vsyncadd [#allocation3], 4294967232  ;;  %s89_s18 = smov [#allocation5]   ;;  %v21_v0 = vld [vmem:[#allocation2] sm:$0xf] }
  0x13   :  { %s29_s19 = sshll.u32 %s89_s18, 4  ;;  %22 = vst [vmem:[#allocation5] sm:$0xf] %v21_v0  ;;  %s30_s19 = int_to_ptr.vmem [resolvable:$true] %s29_s19 }
  0x14   :  { %s62_s20 = scalar_lea.vmem %s30_s19, 64  ;;  %p67_p9 = scmp.lt.s32.totalorder %s30_s19, %s30_s19 }
  0x15   :  { %p63_p8 = scmp.ne.s32.totalorder %s30_s19, %s62_s20  ;;  %p68_p10 = scmp.lt.s32.totalorder %s62_s20, %s62_s20 }
  0x17   :  { %p69_p11 = por %p68_p10, %p67_p9 }
  0x19   :  { %p70_p12 = pnand %p69_p11, %p63_p8 }
  0x1b   :  { %73 = shalt.err (!%p70_p12)
}
  0x1c   :  { %s74_s23 = scalar_lea.hbm %s125_s1, 64 }
  0x1d   :  { %p75_p13 = scmp.ne.s32.totalorder %s125_s1, %s74_s23  ;;  %p78_p0 = scmp.lt.u32.totalorder %s74_s23, %s125_s1 }
  0x1f   :  { %p80_p1 = pnand %p78_p0, %p75_p13 }
  0x21   :  { %83 = shalt.err (!%p80_p1)
}
  0x22   :  { %32 = dma.vmem_to_hbm [thread:$0]  %s30_s19, 64, %s125_s1, [#allocation4]  }
  0x23   :  { %86 = dma.done.wait [#allocation4], 64  }
  0x24   :  { %87 = vsyncadd [#allocation4], 4294967232 }
  0x25   :  { %36 = vsyncpa [#allocation3], 1 }
  0x26   :  { %37 = vsyncpa [#allocation4], 1 }

</bundles_post_ra>
